<compile_context>
chip_gen: v7x
topology: tpu7x:2x2x1
jax: 0.10.0
libtpu: 0.0.40
codegen_flags: <defaults>
</compile_context>

<pallas_src>
import jax
import jax.numpy as jnp
from jax.experimental import pallas as pl
from jax.experimental.pallas import tpu as pltpu

_LANE = 128
_SUBLANE = 8
_XLA_FAST_PATH_FLOPS = 1 << 18  # below ~256K flops, fused XLA beats kernel overhead


def _round_up(v, m):
    return (v + m - 1) // m * m


def _vmem_capacity_bytes():
    """Per-core VMEM capacity; conservative fallback if the query is unavailable."""
    try:
        return int(pltpu.get_tpu_info().vmem_capacity_bytes)
    except Exception:
        return 64 * 1024 * 1024  # v7x per-TensorCore (smallest of the targets)


def _choose_tiles(M, K, Np, itemsize, budget):
    """Pick (TM, TK, TN) that fit `budget` bytes of VMEM.

    Preference: full-K-resident weight (no accumulation loop) > large M tile
    (fewer ~0.35us grid-step overheads, long unmasked stores) > large K/N tiles.
    TK candidates divide K exactly (partial blocks on a contraction axis would
    corrupt the accumulator); TN candidates divide Np (Np is a 128-multiple).
    """
    acc_bytes = 4  # f32 accumulator scratch
    tm_cands = (2048, 1024, 512, 256, 128, 64, 32, 16, 8)
    tn_cands = [Np] + [t for t in (4096, 2048, 1024, 512, 256, 128)
                       if t < Np and Np % t == 0]
    tk_cands = [K] + [t for t in (4096, 2048, 1024, 512, 256, 128)
                      if t < K and K % t == 0]

    best_score, best = None, None
    m_eff = _round_up(M, _SUBLANE)
    for TK in tk_cands:
        for TN in tn_cands:
            w_resident = (TK == K and TN == Np)
            w_bufs = 1 if w_resident else 2
            b_bufs = 1 if TN == Np else 2
            fixed = (w_bufs * TK * TN + b_bufs * TN) * itemsize
            for TM in tm_cands:
                use = fixed + TM * (2 * TK * itemsize        # x (double-buffered)
                                    + 2 * TN * itemsize      # out (double-buffered)
                                    + TN * acc_bytes)        # accumulator scratch
                if use > budget:
                    continue
                score = (TK == K, min(TM, m_eff), TK, TN)
                if best_score is None or score > best_score:
                    best_score, best = score, (TM, TK, TN)
                break  # largest feasible TM for this (TK, TN)

    if best is None:
        # Nothing fits the soft budget; fall back to minimal legal tiles.
        return (_SUBLANE, 128 if K % 128 == 0 else K, min(Np, 128))

    TM, TK, TN = best
    # Don't allocate more M rows than exist.
    TM = min(TM, m_eff)
    if M <= _SUBLANE:
        TM = M  # full-dim block is always legal
    elif pl.cdiv(M, TM) < 2:
        # Keep >= 2 grid steps along M so v7x's second TensorCore has work.
        TM = max(_SUBLANE, _round_up(-(-M // 2), _SUBLANE))
    return TM, TK, TN


def _linear_relu_kernel(x_ref, w_ref, b_ref, o_ref, acc_ref):
    # x_ref: (TM, TK)  w_ref: (TK, TN)  b_ref: (1, TN)  o_ref: (TM, TN)
    k = pl.program_id(2)

    @pl.when(k == 0)
    def _():
        acc_ref[...] = jnp.zeros_like(acc_ref)

    acc_ref[...] += jnp.dot(x_ref[...], w_ref[...],
                            preferred_element_type=jnp.float32)

    @pl.when(k == pl.num_programs(2) - 1)
    def _():
        o_ref[...] = jnp.maximum(acc_ref[...] + b_ref[...], 0.0).astype(o_ref.dtype)


def _linear_relu_pallas(x2d, w_pad, b_pad):
    """relu(x2d @ w_pad + b_pad).  x2d: (M, K), w_pad: (K, Np), b_pad: (1, Np)."""
    M, K = x2d.shape
    _, Np = w_pad.shape
    itemsize = x2d.dtype.itemsize

    cap = _vmem_capacity_bytes()
    budget = int(cap * 0.85)
    TM, TK, TN = _choose_tiles(M, K, Np, itemsize, budget)

    grid = (pl.cdiv(M, TM), Np // TN, K // TK)
    n_tiles, k_tiles = grid[1], grid[2]
    w_resident = (k_tiles == 1 and n_tiles == 1)
    b_resident = (n_tiles == 1)

    x_spec = pl.BlockSpec((TM, TK), lambda i, j, k: (i, k))
    if w_resident:
        # Constant index_map -> single buffer: halves the weight's VMEM cost.
        w_spec = pl.BlockSpec((TK, TN), lambda i, j, k: (0, 0),
                              pipeline_mode=pl.Buffered(1))
    else:
        w_spec = pl.BlockSpec((TK, TN), lambda i, j, k: (k, j))
    if b_resident:
        b_spec = pl.BlockSpec((1, TN), lambda i, j, k: (0, 0),
                              pipeline_mode=pl.Buffered(1))
    else:
        b_spec = pl.BlockSpec((1, TN), lambda i, j, k: (0, j))

    w_bufs = 1 if w_resident else 2
    b_bufs = 1 if b_resident else 2
    usage = ((w_bufs * TK * TN + b_bufs * TN + 2 * TM * TK + 2 * TM * TN) * itemsize
             + TM * TN * 4)
    vmem_limit = int(min(max(usage + (4 << 20), 32 << 20), int(cap * 0.9)))

    out_pad = pl.pallas_call(
        _linear_relu_kernel,
        out_shape=jax.ShapeDtypeStruct((M, Np), x2d.dtype),
        grid_spec=pltpu.PrefetchScalarGridSpec(
            num_scalar_prefetch=0,
            grid=grid,
            in_specs=[x_spec, w_spec, b_spec],
            out_specs=pl.BlockSpec((TM, TN), lambda i, j, k: (i, j)),
            scratch_shapes=[pltpu.VMEM((TM, TN), jnp.float32)],
        ),
        compiler_params=pltpu.CompilerParams(
            dimension_semantics=("parallel", "parallel", "arbitrary"),
            vmem_limit_bytes=vmem_limit,
        ),
        cost_estimate=pl.CostEstimate(
            flops=2 * M * Np * K,
            bytes_accessed=(M * K + K * Np + Np + M * Np) * itemsize,
            transcendentals=0,
        ),
    )(x2d, w_pad, b_pad)
    return out_pad


def prepare_linear_params(weight, bias):
    """One-time parameter layout prep (hoisted out of the per-call hot path).

    weight: (out_dim, in_dim) torch.nn.Linear convention; bias: (out_dim,).
    Returns (w_pad (K, Np), b_pad (1, Np), out_dim) with Np = round_up(out_dim, 128)
    so the kernel's output stores are full-lane / unmasked.
    """
    N, _ = weight.shape
    Np = _round_up(N, _LANE)
    w_t = weight.T
    if Np != N:
        w_t = jnp.pad(w_t, ((0, 0), (0, Np - N)))
        bias = jnp.pad(bias, (0, Np - N))
    return w_t, bias.reshape(1, Np), N


def single_linear_block_apply(x, w_pad, b_pad, out_dim, *, force_pallas=False):
    """Forward with pre-prepared params.  x: (seq, batch, in_dim)."""
    S, B, K = x.shape
    M = S * B
    Np = w_pad.shape[1]
    x2d = x.reshape(M, K)

    if not force_pallas and 2 * M * out_dim * K < _XLA_FAST_PATH_FLOPS:
        # Tiny-shape fast path: kernel/grid/padding overhead dominates here.
        y2d = jnp.maximum(x2d @ w_pad[:, :out_dim] + b_pad[0, :out_dim], 0.0)
        return y2d.reshape(S, B, out_dim)

    y_pad = _linear_relu_pallas(x2d, w_pad, b_pad)
    # Slice off padded lanes only when out_dim is not already lane-aligned
    # (known extra HBM pass; kept because unmasked stores win for large outputs).
    y2d = y_pad if Np == out_dim else y_pad[:, :out_dim]
    return y2d.reshape(S, B, out_dim)


def single_linear_block_forward(x, weight, bias, *, force_pallas=False):
    """Exact forward semantics of SingleLinearBlock.

    The torch transposes swap (seq, batch) around a last-axis Linear + ReLU,
    so they cancel mathematically -- no HBM transpose is performed.
    """
    w_pad, b_pad, n_out = prepare_linear_params(weight, bias)
    return single_linear_block_apply(x, w_pad, b_pad, n_out, force_pallas=force_pallas)


if __name__ == "__main__":
    seq, batch, in_dim, out_dim = 8, 2, 32, 32

    key = jax.random.PRNGKey(0)
    kx, kw, kb = jax.random.split(key, 3)

    x = jax.random.normal(kx, (seq, batch, in_dim), dtype=jnp.float32)

    # Deterministic init matching torch.nn.Linear: U(-1/sqrt(in_dim), 1/sqrt(in_dim))
    bound = 1.0 / (in_dim ** 0.5)
    weight = jax.random.uniform(kw, (out_dim, in_dim), minval=-bound, maxval=bound,
                                dtype=jnp.float32)
    bias = jax.random.uniform(kb, (out_dim,), minval=-bound, maxval=bound,
                              dtype=jnp.float32)

    # Parameters are prepared once (hoisted), then reused per call.
    w_pad, b_pad, n_out = prepare_linear_params(weight, bias)

    # Exercise the Pallas kernel explicitly (at this tiny size the default path
    # would take the XLA fast path).
    y_pallas = single_linear_block_apply(x, w_pad, b_pad, n_out, force_pallas=True)
    jax.block_until_ready(y_pallas)

    # Default dispatch (fast path at this size) must agree as well.
    y_default = single_linear_block_apply(x, w_pad, b_pad, n_out)
    jax.block_until_ready(y_default)

    # Reference written exactly as the torch module does it (with the explicit
    # transposes) to verify the transpose-elision is exact.
    ref = jnp.swapaxes(
        jnp.maximum(jnp.swapaxes(x, 0, 1) @ weight.T + bias, 0.0), 0, 1
    )
    assert y_pallas.shape == (seq, batch, out_dim)
    assert jnp.allclose(y_pallas, ref, atol=1e-5, rtol=1e-5)
    assert jnp.allclose(y_default, ref, atol=1e-5, rtol=1e-5)

    print("KERNEL_OK")
</pallas_src>

<mosaic_0001>
module attributes {stable_mosaic.version = 11 : i64} {
  func.func @_linear_relu_kernel(%arg0: i32, %arg1: i32, %arg2: i32, %arg3: memref<8x32xf32, #tpu.memory_space<vmem>>, %arg4: memref<32x128xf32, #tpu.memory_space<vmem>>, %arg5: memref<1x128xf32, #tpu.memory_space<vmem>>, %arg6: memref<8x128xf32, #tpu.memory_space<vmem>>, %arg7: memref<8x128xf32, #tpu.memory_space<vmem>>) attributes {dimension_semantics = [#tpu.dimension_semantics<parallel>, #tpu.dimension_semantics<parallel>, #tpu.dimension_semantics<arbitrary>], iteration_bounds = array<i64: 2, 1, 1>, scalar_prefetch = 0 : i64, scratch_operands = 1 : i64, tpu.core_type = #tpu.core_type<tc>, window_params = [{transform_indices = @transform_0, window_bounds = array<i64: 8, 32>}, {pipeline_mode = #tpu.pipeline_mode<synchronous>, transform_indices = @transform_1, window_bounds = array<i64: 32, 128>}, {pipeline_mode = #tpu.pipeline_mode<synchronous>, transform_indices = @transform_2, window_bounds = array<i64: 1, 128>}, {transform_indices = @transform_3, window_bounds = array<i64: 8, 128>}]} {
    %c0_i32 = arith.constant 0 : i32
    %0 = arith.cmpi eq, %arg2, %c0_i32 : i32
    %1 = arith.extui %0 : i1 to i32
    %c0_i32_0 = arith.constant 0 : i32
    %2 = arith.cmpi ne, %1, %c0_i32_0 : i32
    scf.if %2 {
      %cst_10 = arith.constant 0.000000e+00 : f32
      %12 = vector.broadcast %cst_10 : f32 to vector<8x128xf32>
      %c0_11 = arith.constant 0 : index
      %c0_12 = arith.constant 0 : index
      %13 = vector.load %arg7[%c0_11, %c0_12] : memref<8x128xf32, #tpu.memory_space<vmem>>, vector<8x128xf32>
      tpu.vector_store %arg7[%c0_11, %c0_12], %12 {strides = array<i32>} : memref<8x128xf32, #tpu.memory_space<vmem>>, vector<8x128xf32>,
    } else {
    }
    %c0 = arith.constant 0 : index
    %c0_1 = arith.constant 0 : index
    %3 = vector.load %arg7[%c0, %c0_1] : memref<8x128xf32, #tpu.memory_space<vmem>>, vector<8x128xf32>
    %c0_2 = arith.constant 0 : index
    %c0_3 = arith.constant 0 : index
    %4 = vector.load %arg3[%c0_2, %c0_3] : memref<8x32xf32, #tpu.memory_space<vmem>>, vector<8x32xf32>
    %c0_4 = arith.constant 0 : index
    %c0_5 = arith.constant 0 : index
    %5 = vector.load %arg4[%c0_4, %c0_5] : memref<32x128xf32, #tpu.memory_space<vmem>>, vector<32x128xf32>
    %cst = arith.constant dense<0.000000e+00> : vector<8x128xf32>
    %6 = tpu.matmul %4, %5, %cst {dimension_numbers = #tpu.dot_dimension_numbers<[1], [0], [0], [1], [0, 0, 1, 1], [], []>} : vector<8x32xf32>, vector<32x128xf32>, vector<8x128xf32> -> vector<8x128xf32>
    %7 = arith.addf %3, %6 : vector<8x128xf32>
    %c0_6 = arith.constant 0 : index
    %c0_7 = arith.constant 0 : index
    %8 = vector.load %arg7[%c0_6, %c0_7] : memref<8x128xf32, #tpu.memory_space<vmem>>, vector<8x128xf32>
    tpu.vector_store %arg7[%c0_6, %c0_7], %7 {strides = array<i32>} : memref<8x128xf32, #tpu.memory_space<vmem>>, vector<8x128xf32>,
    %c0_i32_8 = arith.constant 0 : i32
    %9 = arith.cmpi eq, %arg2, %c0_i32_8 : i32
    %10 = arith.extui %9 : i1 to i32
    %c0_i32_9 = arith.constant 0 : i32
    %11 = arith.cmpi ne, %10, %c0_i32_9 : i32
    scf.if %11 {
      %c0_10 = arith.constant 0 : index
      %c0_11 = arith.constant 0 : index
      %12 = vector.load %arg7[%c0_10, %c0_11] : memref<8x128xf32, #tpu.memory_space<vmem>>, vector<8x128xf32>
      %c0_12 = arith.constant 0 : index
      %c0_13 = arith.constant 0 : index
      %13 = vector.load %arg5[%c0_12, %c0_13] : memref<1x128xf32, #tpu.memory_space<vmem>>, vector<1x128xf32>
      %14 = vector.broadcast %13 : vector<1x128xf32> to vector<8x128xf32>
      %15 = arith.addf %12, %14 : vector<8x128xf32>
      %cst_14 = arith.constant 0.000000e+00 : f32
      %16 = vector.broadcast %cst_14 : f32 to vector<8x128xf32>
      %17 = arith.maximumf %15, %16 : vector<8x128xf32>
      %c0_15 = arith.constant 0 : index
      %c0_16 = arith.constant 0 : index
      %18 = vector.load %arg6[%c0_15, %c0_16] : memref<8x128xf32, #tpu.memory_space<vmem>>, vector<8x128xf32>
      tpu.vector_store %arg6[%c0_15, %c0_16], %17 {strides = array<i32>} : memref<8x128xf32, #tpu.memory_space<vmem>>, vector<8x128xf32>,
    } else {
    }
    return
  }
  func.func @transform_0(%arg0: i32, %arg1: i32, %arg2: i32) -> (i32, i32) {
    %c0_i32 = arith.constant 0 : i32
    return %arg0, %arg2 : i32, i32
  }
  func.func @transform_1(%arg0: i32, %arg1: i32, %arg2: i32) -> (i32, i32) {
    %c0_i32 = arith.constant 0 : i32
    %c0_i32_0 = arith.constant 0 : i32
    %c0_i32_1 = arith.constant 0 : i32
    return %c0_i32, %c0_i32_0 : i32, i32
  }
  func.func @transform_2(%arg0: i32, %arg1: i32, %arg2: i32) -> (i32, i32) {
    %c0_i32 = arith.constant 0 : i32
    %c0_i32_0 = arith.constant 0 : i32
    %c0_i32_1 = arith.constant 0 : i32
    return %c0_i32, %c0_i32_0 : i32, i32
  }
  func.func @transform_3(%arg0: i32, %arg1: i32, %arg2: i32) -> (i32, i32) {
    %c0_i32 = arith.constant 0 : i32
    return %arg0, %arg1 : i32, i32
  }
}

</mosaic_0001>

<bundles_post_ra>
// kernel: tpu_custom_call.1
= control target key start
LH: loop header
LB: loop body
LE: loop exit
PB: predicated region body
PF: predicated region fallthrough
CT: control target
= control target key end

     0   :  { %8 = vsyncpa [#allocation4], 0  ;;  %s942_s0 = inlined_call_operand.hbm [shape: f32[16,32], index: 0, kind: input, shape index: {}]   ;;  %s943_s1 = inlined_call_operand.hbm [shape: f32[32,128], index: 1, kind: input, shape index: {}]   ;;  %s944_s2 = inlined_call_operand.vmem [shape: f32[1,128], index: 2, kind: input, shape index: {}]   ;;  %s945_s3 = inlined_call_operand.hbm [shape: f32[16,128], index: 3, kind: output, shape index: {}]  }
   0x1   :  { %10 = vsyncpa [#allocation4 + $0x1], 0 }
   0x2   :  { %11 = vsyncpa [#allocation7], 0 }
   0x3   :  { %12 = vsyncpa [#allocation5], 0 }
   0x4   :  { %14 = vsyncpa [#allocation5 + $0x1], 0  ;;  %s725_s12 = smov 0   ;;  %s727_s13 = smov 0  }
   0x5   :  { %s729_s14 = smov 0   ;;  %s731_s15 = smov 0  }
   0x6   :  { %s733_s16 = smov 0   ;;  %s735_s17 = smov 0  }
   0x7 LB: > { %s434_s18 = sadd.s32 4294967295, %s695_s17   ;;  %s435_s19 = sadd.s32 4294967294, %s695_s17   ;;  %s695_s17 = sphi %s735_s17, %s20_s17   ;;  %s691_s16 = sphi %s733_s16, %s969_s16   ;;  %s687_s15 = sphi %s731_s15, %s968_s15   ;;  %s683_s14 = sphi %s729_s14, %s967_s14   ;;  %s679_s13 = sphi %s727_s13, %s966_s13   ;;  %s675_s12 = sphi %s725_s12, %s965_s12  }
   0x8   : > { %p61_p0 = scmp.ne.s32.totalorder %s679_s13, %s675_s12  ;;  %p759_p1 = scmp.eq.s32.totalorder %s434_s18, 0 }
   0x9   : > { %p763_p2 = scmp.eq.s32.totalorder %s434_s18, 1  ;;  %p135_p3 = scmp.eq.s32.totalorder %s435_s19, 1 }
   0xa   : > { %s950_s20 = scalar_select %p759_p1, 1, 0 }
   0xb   : > { %s951_s21 = scalar_select %p763_p2, 1, 0 }
   0xc   : > { %p769_p4 = por %p759_p1, %p61_p0  ;;  %p436_p5 = scmp.ge.s32.totalorder %s695_s17, 1 }
   0xd   : > { %p774_p6 = por %p135_p3, %p61_p0  ;;  %p142_p7 = scmp.lt.s32.totalorder %s695_s17, 3 }
   0xe   : > { %s952_s22 = scalar_select %p769_p4, 1, 0 }
   0xf   : > { %s953_s23 = scalar_select %p774_p6, 1, 0 }
  0x10   : > { %p779_p8 = pnand %p436_p5, %p142_p7  ;;  %s697_s25 = smov [#allocation6]  }
  0x11   : > { %s154_s26 = sshll.u32 %s697_s25, 4  ;;  %s39_s28 = sadd.s32 1, %s691_s16  ;;  %s155_s26 = int_to_ptr.vmem [resolvable:$true] %s154_s26 }
  0x12   : > { %s954_s24 = scalar_select %p779_p8, 1, 0 }
  0x13   : > { %p481_p9 = pneg %p779_p8  ;;  %s551_s4 = scalar_lea.hbm %s943_s1, 512 }
  0x14   : > { %p552_p12 = scmp.ne.s32.totalorder %s943_s1, %s551_s4  ;;  %p558_p5 = scmp.lt.u32.totalorder %s551_s4, %s943_s1 }
  0x15   : > { %p788_p11 = pnand %p481_p9, %p759_p1 }
  0x17   : > { %p553_p13 = pneg %p788_p11 }
  0x19   : > { %p554_p0 = pnand %p553_p13, %p552_p12 }
  0x1b   : > { %p555_p3 = pneg %p554_p0 }
  0x1d   : > { %p560_p7 = pnand %p558_p5, %p555_p3 }
  0x1f   : > { %563 = shalt.err (!%p560_p7)
}
  0x20   : > { %s564_s9 = scalar_lea.vmem %s155_s26, 512  ;;  %p572_p1 = scmp.lt.s32.totalorder %s155_s26, %s155_s26 }
  0x21   : > { %p565_p9 = scmp.ne.s32.totalorder %s155_s26, %s564_s9  ;;  %p573_p4 = scmp.lt.s32.totalorder %s564_s9, %s564_s9 }
  0x23   : > { %p567_p10 = pnand %p565_p9, %p553_p13  ;;  %p574_p8 = por %p573_p4, %p572_p1 }
  0x25   : > { %p568_p6 = pneg %p567_p10 }
  0x27   : > { %p575_p2 = pnand %p574_p8, %p568_p6 }
  0x29   : > { %578 = shalt.err (!%p575_p2)
}
  0x2a   : > { %s698_s10 = smov 128   ;;  %s699_s11 = smov 8  }
  0x2b   : > { %484 = dma.hbm_to_vmem [thread:$0]  (!%p788_p11), %s943_s1, 512, %s155_s26, [#allocation7], %s698_s10, %s698_s10, %s699_s11  }
  0x2c   : > { %p41_p1 = scmp.ge.s32.totalorder %s39_s28, 2  ;;  %s48_s25 = sadd.s32 1, %s683_s14 }
  0x2d   : > { %p55_p2 = scmp.ne.s32.totalorder %s683_s14, %s679_s13  ;;  %p56_p4 = scmp.eq.s32.totalorder %s695_s17, 0 }
  0x2e   : > { %s971_s28 = smov (%p41_p1, %s39_s28), 0  ;;  %p957_p8 = scmp.ne.s32.totalorder %s951_s21, 0 }
  0x2f   : > { %p815_p6 = por %p56_p4, %p55_p2  ;;  %s43_s27 = ssub.s32 %s691_s16, %s971_s28 }
  0x30   : > { %p821_p10 = por %p957_p8, %p55_p2  ;;  %p494_p12 = scmp.lt.s32.totalorder %s695_s17, 2 }
  0x31   : > { %p46_p11 = scmp.eq.s32.totalorder %s43_s27, 0  ;;  %s171_s26 = sand.u32 1, %s683_s14  }
  0x32   : > { %s439_s4 = sshll.u32 %s171_s26, 3  ;;  %s440_s6 = sshll.u32 %s691_s16, 7 }
  0x33   : > { %s830_s5 = scalar_select %p46_p11, %s683_s14, %s48_s25  }
  0x34   : > { %s836_s9 = scalar_lea.hbm %s942_s0, %s440_s6  ;;  %s175_s21 = scalar_lea.vmem [#allocation3], %s439_s4 }
  0x35   : > { %s183_s10 = sshll.u32 %s175_s21, 4  ;;  %p842_p13 = pnand %p494_p12, %p815_p6  ;;  %s838_s10 = int_to_ptr.vmem [resolvable:$true] %s183_s10 }
  0x36   : > { %s172_s18 = scalar_lea.sflag [#allocation4], %s171_s26  ;;  %s579_s19 = scalar_lea.hbm %s836_s9, 128 }
  0x37   : > { %p580_p0 = scmp.ne.s32.totalorder %s836_s9, %s579_s19  ;;  %p581_p3 = pneg %p842_p13 }
  0x38   : > { %s584_s4 = scalar_lea.hbm %s942_s0, 256  ;;  %p585_p9 = scmp.lt.u32.totalorder %s836_s9, %s942_s0 }
  0x39   : > { %p582_p5 = pnand %p581_p3, %p580_p0  ;;  %p586_p1 = scmp.lt.u32.totalorder %s584_s4, %s579_s19 }
  0x3a   : > { %p588_p4 = scmp.lt.u32.totalorder %s579_s19, %s836_s9 }
  0x3b   : > { %p583_p7 = pneg %p582_p5  ;;  %p587_p2 = por %p586_p1, %p585_p9 }
  0x3d   : > { %p589_p6 = por %p588_p4, %p587_p2 }
  0x3f   : > { %p590_p8 = pnand %p589_p6, %p583_p7 }
  0x41   : > { %593 = shalt.err (!%p590_p8)
}
  0x42   : > { %s594_s26 = scalar_lea.vmem %s838_s10, 128  ;;  %s700_s7 = smov [#allocation3]  }
  0x43   : > { %p595_p12 = scmp.ne.s32.totalorder %s838_s10, %s594_s26  ;;  %s599_s8 = sshll.u32 %s700_s7, 4  ;;  %s600_s8 = int_to_ptr.vmem [resolvable:$false] %s599_s8 }
  0x44   : > { %s601_s21 = scalar_lea.vmem %s600_s8, 256  ;;  %p602_p5 = scmp.lt.s32.totalorder %s838_s10, %s600_s8 }
  0x45   : > { %p597_p11 = pnand %p595_p12, %p581_p3  ;;  %p603_p9 = scmp.lt.s32.totalorder %s601_s21, %s594_s26 }
  0x47   : > { %p598_p0 = pneg %p597_p11  ;;  %p604_p1 = por %p603_p9, %p602_p5 }
  0x49   : > { %p605_p2 = pnand %p604_p1, %p598_p0 }
  0x4b   : > { %608 = shalt.err (!%p605_p2)
}
  0x4c   : > { %488 = dma.hbm_to_vmem [thread:$0]  (!%p842_p13), %s836_s9, 128, %s838_s10, %s172_s18  }
  0x4d   : > { %p960_p7 = scmp.ne.s32.totalorder %s954_s24, 0 }
  0x4e   : > { %s874_s19 = sand.u32 (!%p960_p7), 1, %s679_s13   ;;  %p961_p3 = scmp.ne.s32.totalorder (!%p960_p7), %s952_s22, 0 }
  0x4f   : > { %192 = sbr.rel (%p960_p7) target bundleno = 331 (0x14b), region = 32  ;;  %s442_s25 = sshll.u32 (!%p960_p7), %s874_s19, 3 }
  0x50   : > { %s195_s27 = scalar_lea.sflag (!%p960_p7), [#allocation4], %s874_s19  ;;  %s198_s4 = scalar_lea.vmem (!%p960_p7), [#allocation3], %s442_s25 }
  0x56   : > { %662 = dma.done.wait (%p961_p3), %s195_s27, 128  }
  0x57   : > { %664 = vsyncadd (%p961_p3), %s195_s27, 4294967168  ;;  %p962_p4 = scmp.ne.s32.totalorder %s950_s20, 0 }
  0x59   : > { %666 = dma.done.wait (%p962_p4), [#allocation7], 512  }
  0x5a   : > { %668 = vsyncadd (%p962_p4), [#allocation7], 4294966784  ;;  %v701_v0 = vmov 0.0|0.0   ;;  %vm702_vm0 = vmmov 0   ;;  %v703_v1 = vmov 0.0   ;;  %v232_v2 = vld [vmem:[#allocation6] sm:$0xff] }
  0x5b   : > { %467 = vmatprep.subr.bf16.mxu0 %v701_v0  ;;  %464 = vmatprep.mubr.msk.f32.mxu0 %vm702_vm0, %v703_v1  ;;  %v233_v3 = vld [vmem:[#allocation6 + $0x8] sm:$0xff]  ;;  %v234_v4 = vld [vmem:[#allocation6 + $0x10] sm:$0xff]  ;;  %v235_v6 = vld [vmem:[#allocation6 + $0x18] sm:$0xff]  ;;  %vm236_vm1 = vcmask 261120   ;;  %s448_s24 = sshll.u32 %s687_s15, 7  ;;  %s224_s9 = scalar_lea.vmem [#allocation8], %s442_s25 }
  0x5c   : > { %v468_v5 = vpack.c.bf16 %v233_v3, %v232_v2  ;;  %v471_v7 = vpack.c.bf16 %v235_v6, %v234_v4  ;;  %v231_v8 = vld [vmem:[%s198_s4] sm:$0xff]  ;;  %s341_s10 = sshll.u32 %s224_s9, 4  ;;  %s893_s29 = scalar_lea.hbm %s945_s3, %s448_s24  ;;  %s895_s10 = int_to_ptr.vmem [resolvable:$true] %s341_s10 }
  0x5d   : > { %v446_v9 = vld [vmem:[%s944_s2] ss:$0 sm:$0xff]  ;;  %s327_s6 = scalar_lea.sflag [#allocation5], %s874_s19  ;;  %s609_s26 = scalar_lea.vmem %s895_s10, 128 }
  0x5e   : > { %469 = vmatpush3.bf16.msra.mxu0 %v468_v5  ;;  %p610_p13 = scmp.ne.s32.totalorder %s895_s10, %s609_s26  ;;  %s704_s15 = smov [#allocation8]  }
  0x5f   : > { %470 = vmatprep.subr.bf16.mxu0 %v701_v0  ;;  %s613_s7 = sshll.u32 %s704_s15, 4  ;;  %s614_s7 = int_to_ptr.vmem [resolvable:$false] %s613_s7 }
  0x60   : > { %p611_p6 = pnand %p610_p13, %p821_p10  ;;  %s615_s8 = scalar_lea.vmem %s614_s7, 256 }
  0x61   : > { %p616_p12 = scmp.lt.s32.totalorder %s895_s10, %s614_s7  ;;  %p617_p11 = scmp.lt.s32.totalorder %s615_s8, %s609_s26 }
  0x62   : > { %472 = vmatpush3.bf16.msra.mxu0 %v471_v7  ;;  %p612_p8 = pneg %p611_p6 }
  0x63   : > { %p618_p0 = por %p617_p11, %p616_p12 }
  0x65   : > { %465 = vmatmul.mubr.msk.f32.vlgmr.msra.gmra.mrb[0].mxu0 %vm236_vm1, %v231_v8  ;;  %p619_p5 = pnand %p618_p0, %p612_p8 }
 0x138   : > { %v306_v10 = vpop.f32.mrb[0].mxu0 }
 0x139   : > { %v323_v11 = vadd.f32 %v446_v9, %v306_v10  ;;  %v466_v12 = vpop.f32.mrb[1].mxu0 }
 0x13b   : > { %v324_v13 = vmax.f32 %v323_v11, 0.0 }
 0x13d   : > { %325 = vst [vmem:[%s224_s9] sm:$0xff] %v324_v13 }
 0x13e   : > { %622 = shalt.err (!%p619_p5)
}
 0x13f   : > { %s623_s21 = scalar_lea.hbm %s893_s29, 128  ;;  %s627_s27 = scalar_lea.hbm %s945_s3, 256 }
 0x140   : > { %p624_p9 = scmp.ne.s32.totalorder %s893_s29, %s623_s21  ;;  %p628_p7 = scmp.lt.u32.totalorder %s893_s29, %s945_s3 }
 0x141   : > { %p629_p3 = scmp.lt.u32.totalorder %s627_s27, %s623_s21  ;;  %p631_p13 = scmp.lt.u32.totalorder %s623_s21, %s893_s29 }
 0x142   : > { %p625_p1 = pnand %p624_p9, %p821_p10 }
 0x143   : > { %p630_p4 = por %p629_p3, %p628_p7 }
 0x144   : > { %p626_p2 = pneg %p625_p1 }
 0x145   : > { %p632_p6 = por %p631_p13, %p630_p4 }
 0x147   : > { %p633_p8 = pnand %p632_p6, %p626_p2 }
 0x149   : > { %636 = shalt.err (!%p633_p8)
}
 0x14a   : > { %479 = dma.vmem_to_hbm [thread:$0]  (%p821_p10), %s895_s10, 128, %s893_s29, %s327_s6  }
 0x14b PF: > { %s353_s22 = sand.u32 1, %s675_s12   ;;  %p963_p12 = scmp.ne.s32.totalorder %s953_s23, 0 }
 0x14c   : > { %p964_p11 = scmp.ge.s32.totalorder %s695_s17, 2  ;;  %s354_s24 = scalar_lea.sflag [#allocation5], %s353_s22 }
 0x14e   : > { %p490_p0 = pnand %p964_p11, %p963_p12 }
 0x150   : > { %670 = dma.done.wait (!%p490_p0), %s354_s24, 128  }
 0x151   : > { %672 = vsyncadd (!%p490_p0), %s354_s24, 4294967168  ;;  %s20_s17 = sadd.s32 1, %s695_s17   ;;  %s965_s12 = smov %s679_s13 }
 0x152   : > { %p17_p5 = scmp.ge.s32.totalorder %s20_s17, 4   ;;  %s966_s13 = smov %s683_s14 }
 0x153   : > { %s967_s14 = smov %s830_s5  ;;  %s968_s15 = smov %s691_s16 }
 0x154   : > { %s969_s16 = smov %s971_s28  ;;  %19 = sbr.rel (!%p17_p5) target bundleno = 7 (0x7), region = 89 }
 0x15b   :  { %359 = vsyncpa [#allocation4], 1 }
 0x15c   :  { %361 = vsyncpa [#allocation4 + $0x1], 1 }
 0x15d   :  { %362 = vsyncpa [#allocation7], 1 }
 0x15e   :  { %363 = vsyncpa [#allocation5], 1 }
 0x15f   :  { %365 = vsyncpa [#allocation5 + $0x1], 1 }

</bundles_post_ra>
